<compile_context>
chip_gen: v7x
topology: tpu7x:2x2x1
jax: 0.10.0
libtpu: 0.0.40
codegen_flags: <defaults>
</compile_context>

<pallas_src>
import functools
import math

import jax
import jax.numpy as jnp
from jax.experimental import pallas as pl
from jax.experimental.pallas import tpu as pltpu


# ----------------------------------------------------------------------------
# generation-aware sizing helpers
# ----------------------------------------------------------------------------
def _round_up(x, m):
    return ((x + m - 1) // m) * m


def _vmem_budget():
    """Returns (vmem_limit_bytes, token_tile_cap) chosen per TPU generation."""
    cap = 64 * 1024 * 1024
    try:
        cap = int(getattr(pltpu.get_tpu_info(), "vmem_capacity_bytes", cap))
    except Exception:
        cap = 64 * 1024 * 1024
    if cap >= 96 * 1024 * 1024:          # v5e / v6e: 128 MiB physical VMEM
        return 96 * 1024 * 1024, 512
    return 40 * 1024 * 1024, 256         # v7x: 64 MiB physical VMEM


def _choose_tm(m, cap):
    # token tile: multiple of 8 (f32 sublane), capped per generation.
    return max(8, min(cap, _round_up(m, 8)))


def _cparams(sem, vmem_bytes):
    return pltpu.CompilerParams(
        dimension_semantics=sem, vmem_limit_bytes=vmem_bytes
    )


# ----------------------------------------------------------------------------
# kernel 1: branch-fused LayerNorm + Linear (K/Q/V projections)
# ----------------------------------------------------------------------------
def _ln_linear_kernel(x_ref, g_ref, b_ref, w_ref, bias_ref, o_ref, *, eps):
    x = x_ref[0]                                              # (tm, H) f32
    mu = jnp.mean(x, axis=-1, keepdims=True)
    var = jnp.mean((x - mu) ** 2, axis=-1, keepdims=True)
    xn = (x - mu) * jax.lax.rsqrt(var + eps)
    y = (xn * g_ref[0] + b_ref[0]).astype(jnp.bfloat16)       # bf16 MXU operand
    o_ref[0] = (
        jnp.dot(y, w_ref[0], preferred_element_type=jnp.float32) + bias_ref[0]
    )


def ln_linear_qkv(x, g, b, w_bf16, bias, *, eps, tm, vmem):
    nb, m, h = x.shape                                        # nb = 3 (k, q, v)
    return pl.pallas_call(
        functools.partial(_ln_linear_kernel, eps=eps),
        out_shape=jax.ShapeDtypeStruct((nb, m, h), jnp.float32),
        grid=(nb, pl.cdiv(m, tm)),
        in_specs=[
            pl.BlockSpec((1, tm, h), lambda br, i: (br, i, 0)),
            pl.BlockSpec((1, 1, h), lambda br, i: (br, 0, 0)),
            pl.BlockSpec((1, 1, h), lambda br, i: (br, 0, 0)),
            pl.BlockSpec((1, h, h), lambda br, i: (br, 0, 0)),
            pl.BlockSpec((1, 1, h), lambda br, i: (br, 0, 0)),
        ],
        out_specs=pl.BlockSpec((1, tm, h), lambda br, i: (br, i, 0)),
        compiler_params=_cparams(("parallel", "parallel"), vmem),
    )(x, g, b, w_bf16, bias)


# ----------------------------------------------------------------------------
# kernel 2: per-batch multi-head attention + fused output projection
# ----------------------------------------------------------------------------
def _attn_kernel(kqv_ref, wo_ref, bo_ref, o_ref, *, num_heads, scale):
    # kqv_ref: (3, 1, S, H) with slot order (k, q, v); wo_ref: (H, H) bf16
    hidden = kqv_ref.shape[3]
    d = hidden // num_heads

    k = kqv_ref[0, 0]                                         # (S, H) f32
    q = kqv_ref[1, 0] * scale                                 # fold 1/sqrt(d)
    v = kqv_ref[2, 0]

    ctx_heads = []
    for hd in range(num_heads):                               # static unroll
        lo = hd * d
        qh = q[:, lo:lo + d].astype(jnp.bfloat16)
        kh = k[:, lo:lo + d].astype(jnp.bfloat16)
        vh = v[:, lo:lo + d].astype(jnp.bfloat16)
        s = jax.lax.dot_general(
            qh, kh, (((1,), (1,)), ((), ())),
            preferred_element_type=jnp.float32,
        )                                                     # (S, S) f32
        s = s - jnp.max(s, axis=-1, keepdims=True)
        p = jnp.exp(s)
        p = p * pl.reciprocal(jnp.sum(p, axis=-1, keepdims=True), approx=True)
        ctx_heads.append(
            jnp.dot(p.astype(jnp.bfloat16), vh,
                    preferred_element_type=jnp.float32)       # (S, d)
        )
    ctx = jnp.concatenate(ctx_heads, axis=-1).astype(jnp.bfloat16)  # (S, H)
    # fused ViTSelfOutput.dense -> lane-dense (S, H) output block
    o_ref[0] = (
        jnp.dot(ctx, wo_ref[...], preferred_element_type=jnp.float32)
        + bo_ref[...]
    )


def attention(kqv, wo_bf16, bo, *, num_heads, scale, vmem):
    nb, b, s, h = kqv.shape
    return pl.pallas_call(
        functools.partial(_attn_kernel, num_heads=num_heads, scale=scale),
        out_shape=jax.ShapeDtypeStruct((b, s, h), jnp.float32),
        grid=(b,),
        in_specs=[
            pl.BlockSpec((nb, 1, s, h), lambda i: (0, i, 0, 0)),
            pl.BlockSpec((h, h), lambda i: (0, 0)),
            pl.BlockSpec((1, h), lambda i: (0, 0)),
        ],
        out_specs=pl.BlockSpec((1, s, h), lambda i: (i, 0, 0)),
        compiler_params=_cparams(("parallel",), vmem),
    )(kqv, wo_bf16, bo)


# ----------------------------------------------------------------------------
# kernel 3: branch-fused residual + LayerNorm + Linear + GELU + Linear
# ----------------------------------------------------------------------------
def _res_ln_ffn_kernel(attn_ref, x_ref, g_ref, b_ref, wi_ref, bi_ref,
                       wo_ref, bo_ref, o_ref, *, eps):
    r = attn_ref[...] + x_ref[0]                              # residual (tm, H)
    mu = jnp.mean(r, axis=-1, keepdims=True)
    var = jnp.mean((r - mu) ** 2, axis=-1, keepdims=True)
    rn = (r - mu) * jax.lax.rsqrt(var + eps)
    rn = (rn * g_ref[0] + b_ref[0]).astype(jnp.bfloat16)
    inter = (
        jnp.dot(rn, wi_ref[0], preferred_element_type=jnp.float32) + bi_ref[0]
    )
    # TODO(synk): torch GELU defaults to exact erf; tanh approximation used.
    inter = jax.nn.gelu(inter, approximate=True).astype(jnp.bfloat16)
    o_ref[0] = (
        jnp.dot(inter, wo_ref[0], preferred_element_type=jnp.float32)
        + bo_ref[0]
    )


def residual_ln_ffn(attn_out, x, g, b, wi_bf16, bi, wo_bf16, bo,
                    *, eps, tm, vmem):
    nb, m, h = x.shape
    inter = wi_bf16.shape[2]
    return pl.pallas_call(
        functools.partial(_res_ln_ffn_kernel, eps=eps),
        out_shape=jax.ShapeDtypeStruct((nb, m, h), jnp.float32),
        grid=(nb, pl.cdiv(m, tm)),
        in_specs=[
            pl.BlockSpec((tm, h), lambda br, i: (i, 0)),
            pl.BlockSpec((1, tm, h), lambda br, i: (br, i, 0)),
            pl.BlockSpec((1, 1, h), lambda br, i: (br, 0, 0)),
            pl.BlockSpec((1, 1, h), lambda br, i: (br, 0, 0)),
            pl.BlockSpec((1, h, inter), lambda br, i: (br, 0, 0)),
            pl.BlockSpec((1, 1, inter), lambda br, i: (br, 0, 0)),
            pl.BlockSpec((1, inter, h), lambda br, i: (br, 0, 0)),
            pl.BlockSpec((1, 1, h), lambda br, i: (br, 0, 0)),
        ],
        out_specs=pl.BlockSpec((1, tm, h), lambda br, i: (br, i, 0)),
        compiler_params=_cparams(("parallel", "parallel"), vmem),
    )(attn_out, x, g, b, wi_bf16, bi, wo_bf16, bo)


# ----------------------------------------------------------------------------
# parameters (nn.Linear weights pre-transposed: (in, out), y = x @ W + b).
# All per-branch params stacked along a leading axis in (K, Q, V) order.
# ----------------------------------------------------------------------------
def init_params(key, hidden, intermediate):
    keys = jax.random.split(key, 16)
    ki = iter(keys)

    def nrm(shape, s=0.02):
        return s * jax.random.normal(next(ki), shape, jnp.float32)

    return {
        "ln_b_g": 1.0 + 0.1 * jax.random.normal(next(ki), (3, 1, hidden), jnp.float32),
        "ln_b_b": nrm((3, 1, hidden), 0.05),
        "w_kqv": nrm((3, hidden, hidden)),        # key / query / value Linear
        "b_kqv": nrm((3, 1, hidden)),
        "w_o": nrm((hidden, hidden)),             # ViTSelfOutput.dense
        "b_o": nrm((1, hidden)),
        "ln_a_g": 1.0 + 0.1 * jax.random.normal(next(ki), (3, 1, hidden), jnp.float32),
        "ln_a_b": nrm((3, 1, hidden), 0.05),
        "w_i": nrm((3, hidden, intermediate)),    # per-branch ViTIntermediate
        "b_i": nrm((3, 1, intermediate)),
        "w_fo": nrm((3, intermediate, hidden)),   # per-branch ViTOutput
        "b_fo": nrm((3, 1, hidden)),
    }


# ----------------------------------------------------------------------------
# ViTLayer_modified forward
# ----------------------------------------------------------------------------
@functools.partial(jax.jit, static_argnames=("num_heads", "eps"))
def vit_layer_forward(K, Q, V, params, *, num_heads, eps):
    b, s, h = K.shape
    d = h // num_heads
    m = b * s
    vmem, tm_cap = _vmem_budget()
    tm = _choose_tm(m, tm_cap)

    # single stacked copy in branch order (K, Q, V), reused by both the
    # projection and FFN kernels (one extra activation copy total).
    x_kqv = jnp.stack([K, Q, V]).reshape(3, m, h)

    # bf16 MXU operands (accumulation stays f32).
    # TODO(synk): store params directly in bf16 to avoid this per-call cast.
    w_kqv = params["w_kqv"].astype(jnp.bfloat16)
    w_o = params["w_o"].astype(jnp.bfloat16)
    w_i = params["w_i"].astype(jnp.bfloat16)
    w_fo = params["w_fo"].astype(jnp.bfloat16)

    # 1) LayerNorm_before + K/Q/V projections (branch-fused)
    kqv = ln_linear_qkv(x_kqv, params["ln_b_g"], params["ln_b_b"],
                        w_kqv, params["b_kqv"], eps=eps, tm=tm, vmem=vmem)
    kqv = kqv.reshape(3, b, s, h)

    # 2) multi-head attention + fused output projection (lane-dense output,
    #    no XLA head split/merge transposes)
    attn = attention(kqv, w_o, params["b_o"],
                     num_heads=num_heads, scale=1.0 / math.sqrt(d), vmem=vmem)
    attn = attn.reshape(m, h)

    # 3) residual + LayerNorm_after + Intermediate(GELU) + Output, all three
    #    branches in one call
    out = residual_ln_ffn(attn, x_kqv, params["ln_a_g"], params["ln_a_b"],
                          w_i, params["b_i"], w_fo, params["b_fo"],
                          eps=eps, tm=tm, vmem=vmem)
    out = out.reshape(3, b, s, h)
    return out[0], out[1], out[2]


# ----------------------------------------------------------------------------
# pure-jnp reference (f32) for the correctness check
# ----------------------------------------------------------------------------
def _reference_forward(K, Q, V, params, *, num_heads, eps):
    b, s, h = K.shape
    d = h // num_heads

    def ln(x, g, bt):
        mu = x.mean(-1, keepdims=True)
        var = ((x - mu) ** 2).mean(-1, keepdims=True)
        return (x - mu) / jnp.sqrt(var + eps) * g + bt

    tk = ln(K, params["ln_b_g"][0], params["ln_b_b"][0])
    tq = ln(Q, params["ln_b_g"][1], params["ln_b_b"][1])
    tv = ln(V, params["ln_b_g"][2], params["ln_b_b"][2])

    k = tk @ params["w_kqv"][0] + params["b_kqv"][0]
    q = tq @ params["w_kqv"][1] + params["b_kqv"][1]
    v = tv @ params["w_kqv"][2] + params["b_kqv"][2]

    def split(x):
        return x.reshape(b, s, num_heads, d).transpose(0, 2, 1, 3)

    qh, kh, vh = split(q), split(k), split(v)
    scores = jnp.einsum("bhqd,bhkd->bhqk", qh, kh) / math.sqrt(d)
    probs = jax.nn.softmax(scores, axis=-1)
    ctx = jnp.einsum("bhqk,bhkd->bhqd", probs, vh)
    ctx = ctx.transpose(0, 2, 1, 3).reshape(b, s, h)
    attn_out = ctx @ params["w_o"] + params["b_o"]

    def branch(x, idx):
        xr = attn_out + x
        y = ln(xr, params["ln_a_g"][idx], params["ln_a_b"][idx])
        y = jax.nn.gelu(y @ params["w_i"][idx] + params["b_i"][idx],
                        approximate=True)
        return y @ params["w_fo"][idx] + params["b_fo"][idx]

    return branch(K, 0), branch(Q, 1), branch(V, 2)


# ----------------------------------------------------------------------------
if __name__ == "__main__":
    B, S, H, NH, I = 2, 8, 32, 4, 64
    eps = 1e-12

    key = jax.random.PRNGKey(0)
    kk, kq, kv, kp = jax.random.split(key, 4)
    K = jax.random.normal(kk, (B, S, H), jnp.float32)
    Q = jax.random.normal(kq, (B, S, H), jnp.float32)
    V = jax.random.normal(kv, (B, S, H), jnp.float32)
    params = init_params(kp, H, I)

    out_k, out_q, out_v = vit_layer_forward(K, Q, V, params, num_heads=NH, eps=eps)
    jax.block_until_ready((out_k, out_q, out_v))

    ref_k, ref_q, ref_v = _reference_forward(K, Q, V, params, num_heads=NH, eps=eps)
    for got, ref in ((out_k, ref_k), (out_q, ref_q), (out_v, ref_v)):
        assert got.shape == (B, S, H), got.shape
        # bf16 matmul operands (f32 accumulation) -> looser tolerance than f32
        assert jnp.allclose(got, ref, atol=2e-2, rtol=2e-2), float(
            jnp.max(jnp.abs(got - ref))
        )

    print("KERNEL_OK")
</pallas_src>

<mosaic_0001>
module attributes {stable_mosaic.version = 11 : i64} {
  func.func @_ln_linear_kernel(%arg0: i32, %arg1: i32, %arg2: memref<1x16x32xf32, #tpu.memory_space<vmem>>, %arg3: memref<1x1x32xf32, #tpu.memory_space<vmem>>, %arg4: memref<1x1x32xf32, #tpu.memory_space<vmem>>, %arg5: memref<1x32x32xbf16, #tpu.memory_space<vmem>>, %arg6: memref<1x1x32xf32, #tpu.memory_space<vmem>>, %arg7: memref<1x16x32xf32, #tpu.memory_space<vmem>>) attributes {dimension_semantics = [#tpu.dimension_semantics<parallel>, #tpu.dimension_semantics<parallel>], iteration_bounds = array<i64: 3, 1>, scalar_prefetch = 0 : i64, scratch_operands = 0 : i64, tpu.core_type = #tpu.core_type<tc>, window_params = [{transform_indices = @transform_0, window_bounds = array<i64: 1, 16, 32>}, {transform_indices = @transform_1, window_bounds = array<i64: 1, 1, 32>}, {transform_indices = @transform_2, window_bounds = array<i64: 1, 1, 32>}, {transform_indices = @transform_3, window_bounds = array<i64: 1, 32, 32>}, {transform_indices = @transform_4, window_bounds = array<i64: 1, 1, 32>}, {transform_indices = @transform_5, window_bounds = array<i64: 1, 16, 32>}]} {
    %c0 = arith.constant 0 : index
    %c0_0 = arith.constant 0 : index
    %c0_1 = arith.constant 0 : index
    %0 = vector.load %arg2[%c0, %c0_0, %c0_1] : memref<1x16x32xf32, #tpu.memory_space<vmem>>, vector<1x16x32xf32>
    %1 = vector.shape_cast %0 : vector<1x16x32xf32> to vector<16x32xf32>
    %cst = arith.constant dense<0.000000e+00> : vector<16xf32>
    %2 = vector.multi_reduction <add>, %1, %cst [1] : vector<16x32xf32> to vector<16xf32>
    %3 = vector.shape_cast %2 : vector<16xf32> to vector<16x1xf32>
    %cst_2 = arith.constant 3.200000e+01 : f32
    %4 = vector.broadcast %cst_2 : f32 to vector<16x1xf32>
    %5 = arith.divf %3, %4 : vector<16x1xf32>
    %6 = vector.broadcast %5 : vector<16x1xf32> to vector<16x32xf32>
    %7 = arith.subf %1, %6 : vector<16x32xf32>
    %8 = arith.mulf %7, %7 : vector<16x32xf32>
    %cst_3 = arith.constant dense<0.000000e+00> : vector<16xf32>
    %9 = vector.multi_reduction <add>, %8, %cst_3 [1] : vector<16x32xf32> to vector<16xf32>
    %10 = vector.shape_cast %9 : vector<16xf32> to vector<16x1xf32>
    %cst_4 = arith.constant 3.200000e+01 : f32
    %11 = vector.broadcast %cst_4 : f32 to vector<16x1xf32>
    %12 = arith.divf %10, %11 : vector<16x1xf32>
    %13 = vector.broadcast %5 : vector<16x1xf32> to vector<16x32xf32>
    %14 = arith.subf %1, %13 : vector<16x32xf32>
    %cst_5 = arith.constant 9.99999996E-13 : f32
    %15 = vector.broadcast %cst_5 : f32 to vector<16x1xf32>
    %16 = arith.addf %12, %15 : vector<16x1xf32>
    %17 = math.rsqrt %16 : vector<16x1xf32>
    %18 = vector.broadcast %17 : vector<16x1xf32> to vector<16x32xf32>
    %19 = arith.mulf %14, %18 : vector<16x32xf32>
    %c0_6 = arith.constant 0 : index
    %c0_7 = arith.constant 0 : index
    %c0_8 = arith.constant 0 : index
    %20 = vector.load %arg3[%c0_6, %c0_7, %c0_8] : memref<1x1x32xf32, #tpu.memory_space<vmem>>, vector<1x1x32xf32>
    %21 = vector.shape_cast %20 : vector<1x1x32xf32> to vector<1x32xf32>
    %22 = vector.broadcast %21 : vector<1x32xf32> to vector<16x32xf32>
    %23 = arith.mulf %19, %22 : vector<16x32xf32>
    %c0_9 = arith.constant 0 : index
    %c0_10 = arith.constant 0 : index
    %c0_11 = arith.constant 0 : index
    %24 = vector.load %arg4[%c0_9, %c0_10, %c0_11] : memref<1x1x32xf32, #tpu.memory_space<vmem>>, vector<1x1x32xf32>
    %25 = vector.shape_cast %24 : vector<1x1x32xf32> to vector<1x32xf32>
    %26 = vector.broadcast %25 : vector<1x32xf32> to vector<16x32xf32>
    %27 = arith.addf %23, %26 : vector<16x32xf32>
    %28 = arith.truncf %27 : vector<16x32xf32> to vector<16x32xbf16>
    %c0_12 = arith.constant 0 : index
    %c0_13 = arith.constant 0 : index
    %c0_14 = arith.constant 0 : index
    %29 = vector.load %arg5[%c0_12, %c0_13, %c0_14] : memref<1x32x32xbf16, #tpu.memory_space<vmem>>, vector<1x32x32xbf16>
    %30 = vector.shape_cast %29 : vector<1x32x32xbf16> to vector<32x32xbf16>
    %cst_15 = arith.constant dense<0.000000e+00> : vector<16x32xf32>
    %31 = tpu.matmul %28, %30, %cst_15 {dimension_numbers = #tpu.dot_dimension_numbers<[1], [0], [0], [1], [0, 0, 1, 1], [], []>} : vector<16x32xbf16>, vector<32x32xbf16>, vector<16x32xf32> -> vector<16x32xf32>
    %c0_16 = arith.constant 0 : index
    %c0_17 = arith.constant 0 : index
    %c0_18 = arith.constant 0 : index
    %32 = vector.load %arg6[%c0_16, %c0_17, %c0_18] : memref<1x1x32xf32, #tpu.memory_space<vmem>>, vector<1x1x32xf32>
    %33 = vector.shape_cast %32 : vector<1x1x32xf32> to vector<1x32xf32>
    %34 = vector.broadcast %33 : vector<1x32xf32> to vector<16x32xf32>
    %35 = arith.addf %31, %34 : vector<16x32xf32>
    %c0_19 = arith.constant 0 : index
    %c0_20 = arith.constant 0 : index
    %c0_21 = arith.constant 0 : index
    %36 = vector.load %arg7[%c0_19, %c0_20, %c0_21] : memref<1x16x32xf32, #tpu.memory_space<vmem>>, vector<1x16x32xf32>
    %37 = vector.shape_cast %36 : vector<1x16x32xf32> to vector<16x32xf32>
    %38 = vector.shape_cast %35 : vector<16x32xf32> to vector<1x16x32xf32>
    tpu.vector_store %arg7[%c0_19, %c0_20, %c0_21], %38 {strides = array<i32>} : memref<1x16x32xf32, #tpu.memory_space<vmem>>, vector<1x16x32xf32>,
    return
  }
  func.func @transform_0(%arg0: i32, %arg1: i32) -> (i32, i32, i32) {
    %c0_i32 = arith.constant 0 : i32
    %c0_i32_0 = arith.constant 0 : i32
    return %arg0, %arg1, %c0_i32 : i32, i32, i32
  }
  func.func @transform_1(%arg0: i32, %arg1: i32) -> (i32, i32, i32) {
    %c0_i32 = arith.constant 0 : i32
    %c0_i32_0 = arith.constant 0 : i32
    %c0_i32_1 = arith.constant 0 : i32
    return %arg0, %c0_i32, %c0_i32_0 : i32, i32, i32
  }
  func.func @transform_2(%arg0: i32, %arg1: i32) -> (i32, i32, i32) {
    %c0_i32 = arith.constant 0 : i32
    %c0_i32_0 = arith.constant 0 : i32
    %c0_i32_1 = arith.constant 0 : i32
    return %arg0, %c0_i32, %c0_i32_0 : i32, i32, i32
  }
  func.func @transform_3(%arg0: i32, %arg1: i32) -> (i32, i32, i32) {
    %c0_i32 = arith.constant 0 : i32
    %c0_i32_0 = arith.constant 0 : i32
    %c0_i32_1 = arith.constant 0 : i32
    return %arg0, %c0_i32, %c0_i32_0 : i32, i32, i32
  }
  func.func @transform_4(%arg0: i32, %arg1: i32) -> (i32, i32, i32) {
    %c0_i32 = arith.constant 0 : i32
    %c0_i32_0 = arith.constant 0 : i32
    %c0_i32_1 = arith.constant 0 : i32
    return %arg0, %c0_i32, %c0_i32_0 : i32, i32, i32
  }
  func.func @transform_5(%arg0: i32, %arg1: i32) -> (i32, i32, i32) {
    %c0_i32 = arith.constant 0 : i32
    %c0_i32_0 = arith.constant 0 : i32
    return %arg0, %arg1, %c0_i32 : i32, i32, i32
  }
}

module attributes {stable_mosaic.version = 11 : i64} {
  func.func @_attn_kernel(%arg0: i32, %arg1: memref<3x1x8x32xf32, #tpu.memory_space<vmem>>, %arg2: memref<32x32xbf16, #tpu.memory_space<vmem>>, %arg3: memref<1x32xf32, #tpu.memory_space<vmem>>, %arg4: memref<1x8x32xf32, #tpu.memory_space<vmem>>) attributes {dimension_semantics = [#tpu.dimension_semantics<parallel>], iteration_bounds = array<i64: 2>, scalar_prefetch = 0 : i64, scratch_operands = 0 : i64, tpu.core_type = #tpu.core_type<tc>, window_params = [{transform_indices = @transform_0, window_bounds = array<i64: 3, 1, 8, 32>}, {pipeline_mode = #tpu.pipeline_mode<synchronous>, transform_indices = @transform_1, window_bounds = array<i64: 32, 32>}, {pipeline_mode = #tpu.pipeline_mode<synchronous>, transform_indices = @transform_2, window_bounds = array<i64: 1, 32>}, {transform_indices = @transform_3, window_bounds = array<i64: 1, 8, 32>}]} {
    %c0 = arith.constant 0 : index
    %c0_0 = arith.constant 0 : index
    %c0_1 = arith.constant 0 : index
    %c0_2 = arith.constant 0 : index
    %0 = vector.load %arg1[%c0, %c0_0, %c0_1, %c0_2] : memref<3x1x8x32xf32, #tpu.memory_space<vmem>>, vector<1x1x8x32xf32>
    %1 = vector.shape_cast %0 : vector<1x1x8x32xf32> to vector<8x32xf32>
    %c1 = arith.constant 1 : index
    %c0_3 = arith.constant 0 : index
    %c0_4 = arith.constant 0 : index
    %c0_5 = arith.constant 0 : index
    %2 = vector.load %arg1[%c1, %c0_3, %c0_4, %c0_5] : memref<3x1x8x32xf32, #tpu.memory_space<vmem>>, vector<1x1x8x32xf32>
    %3 = vector.shape_cast %2 : vector<1x1x8x32xf32> to vector<8x32xf32>
    %cst = arith.constant 0.353553385 : f32
    %4 = vector.broadcast %cst : f32 to vector<8x32xf32>
    %5 = arith.mulf %3, %4 : vector<8x32xf32>
    %c2 = arith.constant 2 : index
    %c0_6 = arith.constant 0 : index
    %c0_7 = arith.constant 0 : index
    %c0_8 = arith.constant 0 : index
    %6 = vector.load %arg1[%c2, %c0_6, %c0_7, %c0_8] : memref<3x1x8x32xf32, #tpu.memory_space<vmem>>, vector<1x1x8x32xf32>
    %7 = vector.shape_cast %6 : vector<1x1x8x32xf32> to vector<8x32xf32>
    %8 = vector.extract_strided_slice %5 {offsets = [0, 0], sizes = [8, 8], strides = [1, 1]} : vector<8x32xf32> to vector<8x8xf32>
    %9 = arith.truncf %8 : vector<8x8xf32> to vector<8x8xbf16>
    %10 = vector.extract_strided_slice %1 {offsets = [0, 0], sizes = [8, 8], strides = [1, 1]} : vector<8x32xf32> to vector<8x8xf32>
    %11 = arith.truncf %10 : vector<8x8xf32> to vector<8x8xbf16>
    %12 = vector.extract_strided_slice %7 {offsets = [0, 0], sizes = [8, 8], strides = [1, 1]} : vector<8x32xf32> to vector<8x8xf32>
    %13 = arith.truncf %12 : vector<8x8xf32> to vector<8x8xbf16>
    %cst_9 = arith.constant dense<0.000000e+00> : vector<8x8xf32>
    %14 = tpu.matmul %9, %11, %cst_9 {dimension_numbers = #tpu.dot_dimension_numbers<[1], [1], [0], [0], [0, 0, 1, 0], [], []>} : vector<8x8xbf16>, vector<8x8xbf16>, vector<8x8xf32> -> vector<8x8xf32>
    %cst_10 = arith.constant dense<0xFF800000> : vector<8xf32>
    %15 = vector.multi_reduction <maximumf>, %14, %cst_10 [1] : vector<8x8xf32> to vector<8xf32>
    %16 = vector.shape_cast %15 : vector<8xf32> to vector<8x1xf32>
    %17 = vector.broadcast %16 : vector<8x1xf32> to vector<8x8xf32>
    %18 = arith.subf %14, %17 : vector<8x8xf32>
    %19 = math.exp %18 : vector<8x8xf32>
    %cst_11 = arith.constant dense<0.000000e+00> : vector<8xf32>
    %20 = vector.multi_reduction <add>, %19, %cst_11 [1] : vector<8x8xf32> to vector<8xf32>
    %21 = vector.shape_cast %20 : vector<8xf32> to vector<8x1xf32>
    %22 = tpu.reciprocal %21 {approx = true} : vector<8x1xf32> -> vector<8x1xf32>
    %23 = vector.broadcast %22 : vector<8x1xf32> to vector<8x8xf32>
    %24 = arith.mulf %19, %23 : vector<8x8xf32>
    %25 = arith.truncf %24 : vector<8x8xf32> to vector<8x8xbf16>
    %cst_12 = arith.constant dense<0.000000e+00> : vector<8x8xf32>
    %26 = tpu.matmul %25, %13, %cst_12 {dimension_numbers = #tpu.dot_dimension_numbers<[1], [0], [0], [1], [0, 0, 1, 1], [], []>} : vector<8x8xbf16>, vector<8x8xbf16>, vector<8x8xf32> -> vector<8x8xf32>
    %27 = vector.extract_strided_slice %5 {offsets = [0, 8], sizes = [8, 8], strides = [1, 1]} : vector<8x32xf32> to vector<8x8xf32>
    %28 = arith.truncf %27 : vector<8x8xf32> to vector<8x8xbf16>
    %29 = vector.extract_strided_slice %1 {offsets = [0, 8], sizes = [8, 8], strides = [1, 1]} : vector<8x32xf32> to vector<8x8xf32>
    %30 = arith.truncf %29 : vector<8x8xf32> to vector<8x8xbf16>
    %31 = vector.extract_strided_slice %7 {offsets = [0, 8], sizes = [8, 8], strides = [1, 1]} : vector<8x32xf32> to vector<8x8xf32>
    %32 = arith.truncf %31 : vector<8x8xf32> to vector<8x8xbf16>
    %cst_13 = arith.constant dense<0.000000e+00> : vector<8x8xf32>
    %33 = tpu.matmul %28, %30, %cst_13 {dimension_numbers = #tpu.dot_dimension_numbers<[1], [1], [0], [0], [0, 0, 1, 0], [], []>} : vector<8x8xbf16>, vector<8x8xbf16>, vector<8x8xf32> -> vector<8x8xf32>
    %cst_14 = arith.constant dense<0xFF800000> : vector<8xf32>
    %34 = vector.multi_reduction <maximumf>, %33, %cst_14 [1] : vector<8x8xf32> to vector<8xf32>
    %35 = vector.shape_cast %34 : vector<8xf32> to vector<8x1xf32>
    %36 = vector.broadcast %35 : vector<8x1xf32> to vector<8x8xf32>
    %37 = arith.subf %33, %36 : vector<8x8xf32>
    %38 = math.exp %37 : vector<8x8xf32>
    %cst_15 = arith.constant dense<0.000000e+00> : vector<8xf32>
    %39 = vector.multi_reduction <add>, %38, %cst_15 [1] : vector<8x8xf32> to vector<8xf32>
    %40 = vector.shape_cast %39 : vector<8xf32> to vector<8x1xf32>
    %41 = tpu.reciprocal %40 {approx = true} : vector<8x1xf32> -> vector<8x1xf32>
    %42 = vector.broadcast %41 : vector<8x1xf32> to vector<8x8xf32>
    %43 = arith.mulf %38, %42 : vector<8x8xf32>
    %44 = arith.truncf %43 : vector<8x8xf32> to vector<8x8xbf16>
    %cst_16 = arith.constant dense<0.000000e+00> : vector<8x8xf32>
    %45 = tpu.matmul %44, %32, %cst_16 {dimension_numbers = #tpu.dot_dimension_numbers<[1], [0], [0], [1], [0, 0, 1, 1], [], []>} : vector<8x8xbf16>, vector<8x8xbf16>, vector<8x8xf32> -> vector<8x8xf32>
    %46 = vector.extract_strided_slice %5 {offsets = [0, 16], sizes = [8, 8], strides = [1, 1]} : vector<8x32xf32> to vector<8x8xf32>
    %47 = arith.truncf %46 : vector<8x8xf32> to vector<8x8xbf16>
    %48 = vector.extract_strided_slice %1 {offsets = [0, 16], sizes = [8, 8], strides = [1, 1]} : vector<8x32xf32> to vector<8x8xf32>
    %49 = arith.truncf %48 : vector<8x8xf32> to vector<8x8xbf16>
    %50 = vector.extract_strided_slice %7 {offsets = [0, 16], sizes = [8, 8], strides = [1, 1]} : vector<8x32xf32> to vector<8x8xf32>
    %51 = arith.truncf %50 : vector<8x8xf32> to vector<8x8xbf16>
    %cst_17 = arith.constant dense<0.000000e+00> : vector<8x8xf32>
    %52 = tpu.matmul %47, %49, %cst_17 {dimension_numbers = #tpu.dot_dimension_numbers<[1], [1], [0], [0], [0, 0, 1, 0], [], []>} : vector<8x8xbf16>, vector<8x8xbf16>, vector<8x8xf32> -> vector<8x8xf32>
    %cst_18 = arith.constant dense<0xFF800000> : vector<8xf32>
    %53 = vector.multi_reduction <maximumf>, %52, %cst_18 [1] : vector<8x8xf32> to vector<8xf32>
    %54 = vector.shape_cast %53 : vector<8xf32> to vector<8x1xf32>
    %55 = vector.broadcast %54 : vector<8x1xf32> to vector<8x8xf32>
    %56 = arith.subf %52, %55 : vector<8x8xf32>
    %57 = math.exp %56 : vector<8x8xf32>
    %cst_19 = arith.constant dense<0.000000e+00> : vector<8xf32>
    %58 = vector.multi_reduction <add>, %57, %cst_19 [1] : vector<8x8xf32> to vector<8xf32>
    %59 = vector.shape_cast %58 : vector<8xf32> to vector<8x1xf32>
    %60 = tpu.reciprocal %59 {approx = true} : vector<8x1xf32> -> vector<8x1xf32>
    %61 = vector.broadcast %60 : vector<8x1xf32> to vector<8x8xf32>
    %62 = arith.mulf %57, %61 : vector<8x8xf32>
    %63 = arith.truncf %62 : vector<8x8xf32> to vector<8x8xbf16>
    %cst_20 = arith.constant dense<0.000000e+00> : vector<8x8xf32>
    %64 = tpu.matmul %63, %51, %cst_20 {dimension_numbers = #tpu.dot_dimension_numbers<[1], [0], [0], [1], [0, 0, 1, 1], [], []>} : vector<8x8xbf16>, vector<8x8xbf16>, vector<8x8xf32> -> vector<8x8xf32>
    %65 = vector.extract_strided_slice %5 {offsets = [0, 24], sizes = [8, 8], strides = [1, 1]} : vector<8x32xf32> to vector<8x8xf32>
    %66 = arith.truncf %65 : vector<8x8xf32> to vector<8x8xbf16>
    %67 = vector.extract_strided_slice %1 {offsets = [0, 24], sizes = [8, 8], strides = [1, 1]} : vector<8x32xf32> to vector<8x8xf32>
    %68 = arith.truncf %67 : vector<8x8xf32> to vector<8x8xbf16>
    %69 = vector.extract_strided_slice %7 {offsets = [0, 24], sizes = [8, 8], strides = [1, 1]} : vector<8x32xf32> to vector<8x8xf32>
    %70 = arith.truncf %69 : vector<8x8xf32> to vector<8x8xbf16>
    %cst_21 = arith.constant dense<0.000000e+00> : vector<8x8xf32>
    %71 = tpu.matmul %66, %68, %cst_21 {dimension_numbers = #tpu.dot_dimension_numbers<[1], [1], [0], [0], [0, 0, 1, 0], [], []>} : vector<8x8xbf16>, vector<8x8xbf16>, vector<8x8xf32> -> vector<8x8xf32>
    %cst_22 = arith.constant dense<0xFF800000> : vector<8xf32>
    %72 = vector.multi_reduction <maximumf>, %71, %cst_22 [1] : vector<8x8xf32> to vector<8xf32>
    %73 = vector.shape_cast %72 : vector<8xf32> to vector<8x1xf32>
    %74 = vector.broadcast %73 : vector<8x1xf32> to vector<8x8xf32>
    %75 = arith.subf %71, %74 : vector<8x8xf32>
    %76 = math.exp %75 : vector<8x8xf32>
    %cst_23 = arith.constant dense<0.000000e+00> : vector<8xf32>
    %77 = vector.multi_reduction <add>, %76, %cst_23 [1] : vector<8x8xf32> to vector<8xf32>
    %78 = vector.shape_cast %77 : vector<8xf32> to vector<8x1xf32>
    %79 = tpu.reciprocal %78 {approx = true} : vector<8x1xf32> -> vector<8x1xf32>
    %80 = vector.broadcast %79 : vector<8x1xf32> to vector<8x8xf32>
    %81 = arith.mulf %76, %80 : vector<8x8xf32>
    %82 = arith.truncf %81 : vector<8x8xf32> to vector<8x8xbf16>
    %cst_24 = arith.constant dense<0.000000e+00> : vector<8x8xf32>
    %83 = tpu.matmul %82, %70, %cst_24 {dimension_numbers = #tpu.dot_dimension_numbers<[1], [0], [0], [1], [0, 0, 1, 1], [], []>} : vector<8x8xbf16>, vector<8x8xbf16>, vector<8x8xf32> -> vector<8x8xf32>
    %84 = tpu.concatenate %26, %45, %64, %83 in 1 : vector<8x8xf32>, vector<8x8xf32>, vector<8x8xf32>, vector<8x8xf32> -> vector<8x32xf32>
    %85 = arith.truncf %84 : vector<8x32xf32> to vector<8x32xbf16>
    %c0_25 = arith.constant 0 : index
    %c0_26 = arith.constant 0 : index
    %86 = vector.load %arg2[%c0_25, %c0_26] : memref<32x32xbf16, #tpu.memory_space<vmem>>, vector<32x32xbf16>
    %cst_27 = arith.constant dense<0.000000e+00> : vector<8x32xf32>
    %87 = tpu.matmul %85, %86, %cst_27 {dimension_numbers = #tpu.dot_dimension_numbers<[1], [0], [0], [1], [0, 0, 1, 1], [], []>} : vector<8x32xbf16>, vector<32x32xbf16>, vector<8x32xf32> -> vector<8x32xf32>
    %c0_28 = arith.constant 0 : index
    %c0_29 = arith.constant 0 : index
    %88 = vector.load %arg3[%c0_28, %c0_29] : memref<1x32xf32, #tpu.memory_space<vmem>>, vector<1x32xf32>
    %89 = vector.broadcast %88 : vector<1x32xf32> to vector<8x32xf32>
    %90 = arith.addf %87, %89 : vector<8x32xf32>
    %c0_30 = arith.constant 0 : index
    %c0_31 = arith.constant 0 : index
    %c0_32 = arith.constant 0 : index
    %91 = vector.load %arg4[%c0_30, %c0_31, %c0_32] : memref<1x8x32xf32, #tpu.memory_space<vmem>>, vector<1x8x32xf32>
    %92 = vector.shape_cast %91 : vector<1x8x32xf32> to vector<8x32xf32>
    %93 = vector.shape_cast %90 : vector<8x32xf32> to vector<1x8x32xf32>
    tpu.vector_store %arg4[%c0_30, %c0_31, %c0_32], %93 {strides = array<i32>} : memref<1x8x32xf32, #tpu.memory_space<vmem>>, vector<1x8x32xf32>,
    return
  }
  func.func @transform_0(%arg0: i32) -> (i32, i32, i32, i32) {
    %c0_i32 = arith.constant 0 : i32
    %c0_i32_0 = arith.constant 0 : i32
    %c0_i32_1 = arith.constant 0 : i32
    %c0_i32_2 = arith.constant 0 : i32
    return %c0_i32, %arg0, %c0_i32_0, %c0_i32_1 : i32, i32, i32, i32
  }
  func.func @transform_1(%arg0: i32) -> (i32, i32) {
    %c0_i32 = arith.constant 0 : i32
    %c0_i32_0 = arith.constant 0 : i32
    %c0_i32_1 = arith.constant 0 : i32
    return %c0_i32, %c0_i32_0 : i32, i32
  }
  func.func @transform_2(%arg0: i32) -> (i32, i32) {
    %c0_i32 = arith.constant 0 : i32
    %c0_i32_0 = arith.constant 0 : i32
    %c0_i32_1 = arith.constant 0 : i32
    return %c0_i32, %c0_i32_0 : i32, i32
  }
  func.func @transform_3(%arg0: i32) -> (i32, i32, i32) {
    %c0_i32 = arith.constant 0 : i32
    %c0_i32_0 = arith.constant 0 : i32
    %c0_i32_1 = arith.constant 0 : i32
    return %arg0, %c0_i32, %c0_i32_0 : i32, i32, i32
  }
}

module attributes {stable_mosaic.version = 11 : i64} {
  func.func @_res_ln_ffn_kernel(%arg0: i32, %arg1: i32, %arg2: memref<16x32xf32, #tpu.memory_space<vmem>>, %arg3: memref<1x16x32xf32, #tpu.memory_space<vmem>>, %arg4: memref<1x1x32xf32, #tpu.memory_space<vmem>>, %arg5: memref<1x1x32xf32, #tpu.memory_space<vmem>>, %arg6: memref<1x32x64xbf16, #tpu.memory_space<vmem>>, %arg7: memref<1x1x64xf32, #tpu.memory_space<vmem>>, %arg8: memref<1x64x32xbf16, #tpu.memory_space<vmem>>, %arg9: memref<1x1x32xf32, #tpu.memory_space<vmem>>, %arg10: memref<1x16x32xf32, #tpu.memory_space<vmem>>) attributes {dimension_semantics = [#tpu.dimension_semantics<parallel>, #tpu.dimension_semantics<parallel>], iteration_bounds = array<i64: 3, 1>, scalar_prefetch = 0 : i64, scratch_operands = 0 : i64, tpu.core_type = #tpu.core_type<tc>, window_params = [{transform_indices = @transform_0, window_bounds = array<i64: 16, 32>}, {transform_indices = @transform_1, window_bounds = array<i64: 1, 16, 32>}, {transform_indices = @transform_2, window_bounds = array<i64: 1, 1, 32>}, {transform_indices = @transform_3, window_bounds = array<i64: 1, 1, 32>}, {transform_indices = @transform_4, window_bounds = array<i64: 1, 32, 64>}, {transform_indices = @transform_5, window_bounds = array<i64: 1, 1, 64>}, {transform_indices = @transform_6, window_bounds = array<i64: 1, 64, 32>}, {transform_indices = @transform_7, window_bounds = array<i64: 1, 1, 32>}, {transform_indices = @transform_8, window_bounds = array<i64: 1, 16, 32>}]} {
    %c0 = arith.constant 0 : index
    %c0_0 = arith.constant 0 : index
    %0 = vector.load %arg2[%c0, %c0_0] : memref<16x32xf32, #tpu.memory_space<vmem>>, vector<16x32xf32>
    %c0_1 = arith.constant 0 : index
    %c0_2 = arith.constant 0 : index
    %c0_3 = arith.constant 0 : index
    %1 = vector.load %arg3[%c0_1, %c0_2, %c0_3] : memref<1x16x32xf32, #tpu.memory_space<vmem>>, vector<1x16x32xf32>
    %2 = vector.shape_cast %1 : vector<1x16x32xf32> to vector<16x32xf32>
    %3 = arith.addf %0, %2 : vector<16x32xf32>
    %cst = arith.constant dense<0.000000e+00> : vector<16xf32>
    %4 = vector.multi_reduction <add>, %3, %cst [1] : vector<16x32xf32> to vector<16xf32>
    %5 = vector.shape_cast %4 : vector<16xf32> to vector<16x1xf32>
    %cst_4 = arith.constant 3.200000e+01 : f32
    %6 = vector.broadcast %cst_4 : f32 to vector<16x1xf32>
    %7 = arith.divf %5, %6 : vector<16x1xf32>
    %8 = vector.broadcast %7 : vector<16x1xf32> to vector<16x32xf32>
    %9 = arith.subf %3, %8 : vector<16x32xf32>
    %10 = arith.mulf %9, %9 : vector<16x32xf32>
    %cst_5 = arith.constant dense<0.000000e+00> : vector<16xf32>
    %11 = vector.multi_reduction <add>, %10, %cst_5 [1] : vector<16x32xf32> to vector<16xf32>
    %12 = vector.shape_cast %11 : vector<16xf32> to vector<16x1xf32>
    %cst_6 = arith.constant 3.200000e+01 : f32
    %13 = vector.broadcast %cst_6 : f32 to vector<16x1xf32>
    %14 = arith.divf %12, %13 : vector<16x1xf32>
    %15 = vector.broadcast %7 : vector<16x1xf32> to vector<16x32xf32>
    %16 = arith.subf %3, %15 : vector<16x32xf32>
    %cst_7 = arith.constant 9.99999996E-13 : f32
    %17 = vector.broadcast %cst_7 : f32 to vector<16x1xf32>
    %18 = arith.addf %14, %17 : vector<16x1xf32>
    %19 = math.rsqrt %18 : vector<16x1xf32>
    %20 = vector.broadcast %19 : vector<16x1xf32> to vector<16x32xf32>
    %21 = arith.mulf %16, %20 : vector<16x32xf32>
    %c0_8 = arith.constant 0 : index
    %c0_9 = arith.constant 0 : index
    %c0_10 = arith.constant 0 : index
    %22 = vector.load %arg4[%c0_8, %c0_9, %c0_10] : memref<1x1x32xf32, #tpu.memory_space<vmem>>, vector<1x1x32xf32>
    %23 = vector.shape_cast %22 : vector<1x1x32xf32> to vector<1x32xf32>
    %24 = vector.broadcast %23 : vector<1x32xf32> to vector<16x32xf32>
    %25 = arith.mulf %21, %24 : vector<16x32xf32>
    %c0_11 = arith.constant 0 : index
    %c0_12 = arith.constant 0 : index
    %c0_13 = arith.constant 0 : index
    %26 = vector.load %arg5[%c0_11, %c0_12, %c0_13] : memref<1x1x32xf32, #tpu.memory_space<vmem>>, vector<1x1x32xf32>
    %27 = vector.shape_cast %26 : vector<1x1x32xf32> to vector<1x32xf32>
    %28 = vector.broadcast %27 : vector<1x32xf32> to vector<16x32xf32>
    %29 = arith.addf %25, %28 : vector<16x32xf32>
    %30 = arith.truncf %29 : vector<16x32xf32> to vector<16x32xbf16>
    %c0_14 = arith.constant 0 : index
    %c0_15 = arith.constant 0 : index
    %c0_16 = arith.constant 0 : index
    %31 = vector.load %arg6[%c0_14, %c0_15, %c0_16] : memref<1x32x64xbf16, #tpu.memory_space<vmem>>, vector<1x32x64xbf16>
    %32 = vector.shape_cast %31 : vector<1x32x64xbf16> to vector<32x64xbf16>
    %cst_17 = arith.constant dense<0.000000e+00> : vector<16x64xf32>
    %33 = tpu.matmul %30, %32, %cst_17 {dimension_numbers = #tpu.dot_dimension_numbers<[1], [0], [0], [1], [0, 0, 1, 1], [], []>} : vector<16x32xbf16>, vector<32x64xbf16>, vector<16x64xf32> -> vector<16x64xf32>
    %c0_18 = arith.constant 0 : index
    %c0_19 = arith.constant 0 : index
    %c0_20 = arith.constant 0 : index
    %34 = vector.load %arg7[%c0_18, %c0_19, %c0_20] : memref<1x1x64xf32, #tpu.memory_space<vmem>>, vector<1x1x64xf32>
    %35 = vector.shape_cast %34 : vector<1x1x64xf32> to vector<1x64xf32>
    %36 = vector.broadcast %35 : vector<1x64xf32> to vector<16x64xf32>
    %37 = arith.addf %33, %36 : vector<16x64xf32>
    %38 = arith.mulf %37, %37 : vector<16x64xf32>
    %39 = arith.mulf %37, %38 : vector<16x64xf32>
    %cst_21 = arith.constant 4.471500e-02 : f32
    %40 = vector.broadcast %cst_21 : f32 to vector<16x64xf32>
    %41 = arith.mulf %40, %39 : vector<16x64xf32>
    %42 = arith.addf %37, %41 : vector<16x64xf32>
    %cst_22 = arith.constant 0.797884583 : f32
    %43 = vector.broadcast %cst_22 : f32 to vector<16x64xf32>
    %44 = arith.mulf %43, %42 : vector<16x64xf32>
    %45 = math.tanh %44 : vector<16x64xf32>
    %cst_23 = arith.constant 1.000000e+00 : f32
    %46 = vector.broadcast %cst_23 : f32 to vector<16x64xf32>
    %47 = arith.addf %46, %45 : vector<16x64xf32>
    %cst_24 = arith.constant 5.000000e-01 : f32
    %48 = vector.broadcast %cst_24 : f32 to vector<16x64xf32>
    %49 = arith.mulf %48, %47 : vector<16x64xf32>
    %50 = arith.mulf %37, %49 : vector<16x64xf32>
    %51 = arith.truncf %50 : vector<16x64xf32> to vector<16x64xbf16>
    %c0_25 = arith.constant 0 : index
    %c0_26 = arith.constant 0 : index
    %c0_27 = arith.constant 0 : index
    %52 = vector.load %arg8[%c0_25, %c0_26, %c0_27] : memref<1x64x32xbf16, #tpu.memory_space<vmem>>, vector<1x64x32xbf16>
    %53 = vector.shape_cast %52 : vector<1x64x32xbf16> to vector<64x32xbf16>
    %cst_28 = arith.constant dense<0.000000e+00> : vector<16x32xf32>
    %54 = tpu.matmul %51, %53, %cst_28 {dimension_numbers = #tpu.dot_dimension_numbers<[1], [0], [0], [1], [0, 0, 1, 1], [], []>} : vector<16x64xbf16>, vector<64x32xbf16>, vector<16x32xf32> -> vector<16x32xf32>
    %c0_29 = arith.constant 0 : index
    %c0_30 = arith.constant 0 : index
    %c0_31 = arith.constant 0 : index
    %55 = vector.load %arg9[%c0_29, %c0_30, %c0_31] : memref<1x1x32xf32, #tpu.memory_space<vmem>>, vector<1x1x32xf32>
    %56 = vector.shape_cast %55 : vector<1x1x32xf32> to vector<1x32xf32>
    %57 = vector.broadcast %56 : vector<1x32xf32> to vector<16x32xf32>
    %58 = arith.addf %54, %57 : vector<16x32xf32>
    %c0_32 = arith.constant 0 : index
    %c0_33 = arith.constant 0 : index
    %c0_34 = arith.constant 0 : index
    %59 = vector.load %arg10[%c0_32, %c0_33, %c0_34] : memref<1x16x32xf32, #tpu.memory_space<vmem>>, vector<1x16x32xf32>
    %60 = vector.shape_cast %59 : vector<1x16x32xf32> to vector<16x32xf32>
    %61 = vector.shape_cast %58 : vector<16x32xf32> to vector<1x16x32xf32>
    tpu.vector_store %arg10[%c0_32, %c0_33, %c0_34], %61 {strides = array<i32>} : memref<1x16x32xf32, #tpu.memory_space<vmem>>, vector<1x16x32xf32>,
    return
  }
  func.func @transform_0(%arg0: i32, %arg1: i32) -> (i32, i32) {
    %c0_i32 = arith.constant 0 : i32
    %c0_i32_0 = arith.constant 0 : i32
    return %arg1, %c0_i32 : i32, i32
  }
  func.func @transform_1(%arg0: i32, %arg1: i32) -> (i32, i32, i32) {
    %c0_i32 = arith.constant 0 : i32
    %c0_i32_0 = arith.constant 0 : i32
    return %arg0, %arg1, %c0_i32 : i32, i32, i32
  }
  func.func @transform_2(%arg0: i32, %arg1: i32) -> (i32, i32, i32) {
    %c0_i32 = arith.constant 0 : i32
    %c0_i32_0 = arith.constant 0 : i32
    %c0_i32_1 = arith.constant 0 : i32
    return %arg0, %c0_i32, %c0_i32_0 : i32, i32, i32
  }
  func.func @transform_3(%arg0: i32, %arg1: i32) -> (i32, i32, i32) {
    %c0_i32 = arith.constant 0 : i32
    %c0_i32_0 = arith.constant 0 : i32
    %c0_i32_1 = arith.constant 0 : i32
    return %arg0, %c0_i32, %c0_i32_0 : i32, i32, i32
  }
  func.func @transform_4(%arg0: i32, %arg1: i32) -> (i32, i32, i32) {
    %c0_i32 = arith.constant 0 : i32
    %c0_i32_0 = arith.constant 0 : i32
    %c0_i32_1 = arith.constant 0 : i32
    return %arg0, %c0_i32, %c0_i32_0 : i32, i32, i32
  }
  func.func @transform_5(%arg0: i32, %arg1: i32) -> (i32, i32, i32) {
    %c0_i32 = arith.constant 0 : i32
    %c0_i32_0 = arith.constant 0 : i32
    %c0_i32_1 = arith.constant 0 : i32
    return %arg0, %c0_i32, %c0_i32_0 : i32, i32, i32
  }
  func.func @transform_6(%arg0: i32, %arg1: i32) -> (i32, i32, i32) {
    %c0_i32 = arith.constant 0 : i32
    %c0_i32_0 = arith.constant 0 : i32
    %c0_i32_1 = arith.constant 0 : i32
    return %arg0, %c0_i32, %c0_i32_0 : i32, i32, i32
  }
  func.func @transform_7(%arg0: i32, %arg1: i32) -> (i32, i32, i32) {
    %c0_i32 = arith.constant 0 : i32
    %c0_i32_0 = arith.constant 0 : i32
    %c0_i32_1 = arith.constant 0 : i32
    return %arg0, %c0_i32, %c0_i32_0 : i32, i32, i32
  }
  func.func @transform_8(%arg0: i32, %arg1: i32) -> (i32, i32, i32) {
    %c0_i32 = arith.constant 0 : i32
    %c0_i32_0 = arith.constant 0 : i32
    return %arg0, %arg1, %c0_i32 : i32, i32, i32
  }
}

</mosaic_0001>

<bundles_post_ra>
// kernel: vit_layer_forward.3
= control target key start
LH: loop header
LB: loop body
LE: loop exit
PB: predicated region body
PF: predicated region fallthrough
CT: control target
= control target key end

     0   :  { %s692_s18 = smov 0   ;;  %s694_s19 = smov 0   ;;  %s755_s0 = inlined_call_operand.vmem [shape: f32[3,16,32], index: 0, kind: input, shape index: {}]   ;;  %s756_s1 = inlined_call_operand.vmem [shape: f32[3,1,32], index: 1, kind: input, shape index: {}]   ;;  %s757_s2 = inlined_call_operand.vmem [shape: f32[3,1,32], index: 2, kind: input, shape index: {}]   ;;  %s758_s3 = inlined_call_operand.vmem [shape: bf16[3,32,32], index: 3, kind: input, shape index: {}]   ;;  %s759_s4 = inlined_call_operand.vmem [shape: f32[3,1,32], index: 4, kind: input, shape index: {}]   ;;  %s760_s5 = inlined_call_operand.vmem [shape: f32[3,16,32], index: 5, kind: output, shape index: {}]  }
   0x1   :  { %s696_s20 = smov 0  }
   0x2 LB: > { %s27_s21 = sadd.s32 1, %s654_s19  ;;  %p575_p0 = scmp.ge.s32.totalorder %s658_s20, 1  ;;  %s658_s20 = sphi %s696_s20, %s15_s20   ;;  %s654_s19 = sphi %s694_s19, %s762_s19   ;;  %s650_s18 = sphi %s692_s18, %s761_s18  }
   0x3   : > { %p29_p1 = scmp.ge.s32.totalorder %s27_s21, 3  ;;  %p242_p2 = scmp.lt.s32.totalorder %s658_s20, 4 }
   0x5   : > { %s764_s21 = smov (%p29_p1, %s27_s21), 0  ;;  %p243_p3 = pnand %p575_p0, %p242_p2 }
   0x6   : > { %p293_p4 = scmp.lt.s32.totalorder (!%p243_p3), %s650_s18, 2  ;;  %vm329_vm0 = vcmask (!%p243_p3), 261120   ;;  %v660_v15 = vmov (!%p243_p3), 0.0   ;;  %vm661_vm1 = vmmov (!%p243_p3), 0  }
   0x7   : > { %246 = sbr.rel (%p243_p3) target bundleno = 554 (0x22a), region = 40  ;;  %596 = vmatprep.subr.bf16.mxu0 (!%p243_p3), %v660_v15  ;;  %600 = vmatprep.mubr.msk.bf16.mxu0 (!%p243_p3), %vm661_vm1, %v660_v15 }
   0xe   : > { %s766_s18 = smov (!%p293_p4, %s650_s18), 2 }
   0xf   : > { %s713_s22 = sshll.u32 %s766_s18, 4  ;;  %s304_s6 = scalar_lea.vmem %s756_s1, %s766_s18 }
  0x10   : > { %s300_s25 = scalar_lea.vmem %s755_s0, %s713_s22  ;;  %s312_s28 = scalar_lea.vmem %s758_s3, %s713_s22  ;;  %v582_v25 = vld [vmem:[%s304_s6] ss:$0 sm:$0xff] }
  0x11   : > { %v327_v0 = vld [vmem:[%s300_s25] sm:$0xff]  ;;  %v328_v1 = vld [vmem:[%s300_s25 + $0x8] sm:$0xff]  ;;  %s307_s9 = scalar_lea.vmem %s757_s2, %s766_s18  ;;  %s315_s12 = scalar_lea.vmem %s759_s4, %s766_s18 }
  0x12   : > { %v330_v2 = vsel %vm329_vm0, %v327_v0, 0.0  ;;  %v333_v3 = vsel %vm329_vm0, %v328_v1, 0.0  ;;  %v630_v14 = vld [vmem:[%s312_s28] sm:$0xff]   ;;  %v631_v16 = vld [vmem:[%s312_s28 + $0x8] sm:$0xff]   ;;  %s324_s15 = scalar_lea.vmem %s760_s5, %s713_s22 }
  0x13   : > { %331 = vadd.xlane.f32.xlu0 %v330_v2  ;;  %597 = vmatpush3.bf16.msra.mxu0 %v630_v14  ;;  %v583_v29 = vld [vmem:[%s307_s9] ss:$0 sm:$0xff] }
  0x14   : > { %598 = vmatprep.subr.bf16.mxu0 %v660_v15  ;;  %v584_v34 = vld [vmem:[%s315_s12] ss:$0 sm:$0xff] }
  0x17   : > { %334 = vadd.xlane.f32.xlu0 %v333_v3  ;;  %599 = vmatpush3.bf16.msra.mxu0 %v631_v16 }
  0xa0   : > { %v332_v4 = vpop.xlane.xlu0 %331 }
  0xa1   : > { %v337_v5 = vmul.f32 0.03125, %v332_v4 }
  0xa3   : > { %v339_v6 = vsub.f32 %v327_v0, %v337_v5 }
  0xa4   : > { %v335_v7 = vpop.xlane.xlu0 %334 }
  0xa5   : > { %v338_v8 = vmul.f32 0.03125, %v335_v7  ;;  %v341_v9 = vmul.f32 %v339_v6, %v339_v6 }
  0xa7   : > { %v340_v10 = vsub.f32 %v328_v1, %v338_v8  ;;  %v343_v11 = vsel %vm329_vm0, %v341_v9, 0.0 }
  0xa8   : > { %344 = vadd.xlane.f32.xlu1 %v343_v11 }
  0xa9   : > { %v342_v12 = vmul.f32 %v340_v10, %v340_v10 }
  0xab   : > { %v346_v13 = vsel %vm329_vm0, %v342_v12, 0.0 }
  0xac   : > { %347 = vadd.xlane.f32.xlu1 %v346_v13 }
 0x135   : > { %v345_v17 = vpop.xlane.xlu1 %344 }
 0x136   : > { %v349_v18 = vmul.f32 0.03125, %v345_v17 }
 0x138   : > { %v351_v19 = vadd.f32 1e-12, %v349_v18 }
 0x139   : > { %v348_v20 = vpop.xlane.xlu1 %347 }
 0x13a   : > { %632 = vrsqrt.f32 %v351_v19  ;;  %v350_v21 = vmul.f32 0.03125, %v348_v20 }
 0x13c   : > { %v352_v22 = vadd.f32 1e-12, %v350_v21 }
 0x13e   : > { %634 = vrsqrt.f32 %v352_v22 }
 0x144   : > { %v633_v23 = vpop.eup %632 }
 0x145   : > { %v355_v24 = vmul.f32 %v633_v23, %v339_v6 }
 0x147   : > { %v364_v28 = vmul.f32 %v582_v25, %v355_v24 }
 0x148   : > { %v635_v26 = vpop.eup %634 }
 0x149   : > { %v356_v27 = vmul.f32 %v635_v26, %v340_v10  ;;  %v373_v31 = vadd.f32 %v583_v29, %v364_v28 }
 0x14b   : > { %v365_v30 = vmul.f32 %v582_v25, %v356_v27 }
 0x14d   : > { %v374_v32 = vadd.f32 %v583_v29, %v365_v30 }
 0x14f   : > { %v375_v33 = vpack.c.bf16 %v374_v32, %v373_v31 }
 0x151   : > { %601 = vmatmul.mubr.msk.bf16.vlgmr.msra.gmra.mrb[0].mxu0 %vm329_vm0, %v375_v33 }
 0x224   : > { %v436_v35 = vpop.f32.mrb[0].mxu0 }
 0x225   : > { %v437_v36 = vadd.f32 %v584_v34, %v436_v35  ;;  %v602_v37 = vpop.f32.mrb[1].mxu0 }
 0x226   : > { %v439_v38 = vpop.f32.mrb[2].mxu0 }
 0x227   : > { %443 = vst.msk [vmem:[%s324_s15] sm:$0xff] %vm329_vm0, %v437_v36  ;;  %v440_v39 = vadd.f32 %v584_v34, %v439_v38  ;;  %v603_v40 = vpop.f32.mrb[3].mxu0 }
 0x229   : > { %444 = vst.msk [vmem:[%s324_s15 + $0x8] sm:$0xff] %vm329_vm0, %v440_v39 }
 0x22a PF: > { %s15_s20 = sadd.s32 1, %s658_s20   ;;  %s761_s18 = smov %s654_s19 }
 0x22b   : > { %p12_p5 = scmp.ge.s32.totalorder %s15_s20, 5   ;;  %s762_s19 = smov %s764_s21 }
 0x22d   :  { %14 = sbr.rel (!%p12_p5) target bundleno = 2 (0x2), region = 82 }

// kernel: vit_layer_forward.4
= control target key start
LH: loop header
LB: loop body
LE: loop exit
PB: predicated region body
PF: predicated region fallthrough
CT: control target
= control target key end

     0   :  { %s1007_s12 = smov 0   ;;  %s1009_s13 = smov 0   ;;  %s1146_s0 = inlined_call_operand.vmem [shape: f32[3,2,8,32], index: 0, kind: input, shape index: {}]   ;;  %s1147_s1 = inlined_call_operand.vmem [shape: bf16[32,32], index: 1, kind: input, shape index: {}]   ;;  %s1148_s2 = inlined_call_operand.vmem [shape: f32[1,32], index: 2, kind: input, shape index: {}]   ;;  %s1149_s3 = inlined_call_operand.vmem [shape: f32[2,8,32], index: 3, kind: output, shape index: {}]  }
   0x1   :  { %s1011_s14 = smov 0  }
   0x2 LB: > { %s805_s15 = sadd.s32 4294967295, %s977_s14   ;;  %s1024_s16 = sadd.s32 1, %s977_s14   ;;  %s977_s14 = sphi %s1011_s14, %s1152_s14   ;;  %s973_s13 = sphi %s1009_s13, %s1151_s13   ;;  %s969_s12 = sphi %s1007_s12, %s1150_s12  }
   0x3   : > { %s17_s17 = ssub.s32 %s977_s14, %s1024_s16  ;;  %s20_s18 = sadd.s32 1, %s973_s13 }
   0x4   : > { %p18_p0 = scmp.eq.s32.totalorder %s17_s17, 0  ;;  %p27_p1 = scmp.ne.s32.totalorder %s973_s13, %s969_s12 }
   0x5   : > { %p28_p2 = scmp.eq.s32.totalorder %s977_s14, 0  ;;  %p808_p4 = scmp.ge.s32.totalorder %s977_s14, 2 }
   0x6   : > { %s1033_s19 = scalar_select %p18_p0, %s973_s13, %s20_s18  }
   0x7   : > { %p29_p3 = por %p28_p2, %p27_p1  ;;  %127 = sbr.rel (%p808_p4) target bundleno = 21 (0x15), region = 24 }
   0xe   : > { %130 = sbr.rel (!%p29_p3) target bundleno = 21 (0x15), region = 28  ;;  %s132_s20 = sand.u32 (%p29_p3), 1, %s973_s13  }
   0xf   : > { %s809_s21 = sshll.u32 (%p29_p3), %s977_s14, 3  ;;  %s903_s22 = smul.u32 (%p29_p3), 24, %s132_s20 }
  0x10   : > { %s136_s25 = scalar_lea.vmem (%p29_p3), %s1146_s0, %s809_s21 }
  0x11   : > { %v168_v0 = vld [vmem:[%s136_s25] sm:$0xff] (%p29_p3)  ;;  %v170_v1 = vld [vmem:[%s136_s25 + $0x10] sm:$0xff] (%p29_p3)  ;;  %s134_s26 = scalar_lea.vmem (%p29_p3), [#allocation2], %s903_s22 }
  0x12   : > { %v172_v2 = vld [vmem:[%s136_s25 + $0x20] sm:$0xff] (%p29_p3)  ;;  %169 = vst [vmem:[%s134_s26] sm:$0xff] (%p29_p3), %v168_v0  ;;  %171 = vst [vmem:[%s134_s26 + $0x8] sm:$0xff] (%p29_p3), %v170_v1 }
  0x13   : > { %173 = vst [vmem:[%s134_s26 + $0x10] sm:$0xff] (%p29_p3), %v172_v2 }
  0x15 PF: > { %p810_p5 = scmp.ge.s32.totalorder %s977_s14, 1  ;;  %p178_p6 = scmp.lt.s32.totalorder %s977_s14, 3 }
  0x17   : > { %p179_p7 = pnand %p810_p5, %p178_p6 }
  0x18   : > { %s185_s27 = sand.u32 (!%p179_p7), 1, %s969_s12   ;;  %v979_v3 = vmov (!%p179_p7), 0.0   ;;  %vm980_vm0 = vmmov (!%p179_p7), 0   ;;  %vm221_vm1 = vcmask (!%p179_p7), 64512   ;;  %s981_s30 = smov (!%p179_p7), 120   ;;  %vm283_vm2 = vcmask (!%p179_p7), 1043456  }
  0x19   : > { %182 = sbr.rel (%p179_p7) target bundleno = 1702 (0x6a6), region = 66  ;;  %847 = vmatprep.subr.bf16.mxu0 (!%p179_p7), %v979_v3  ;;  %849 = vmatprep.mubr.msk.bf16.mxu0 (!%p179_p7), %vm980_vm0, %v979_v3  ;;  %s982_s4 = smov (!%p179_p7), 112   ;;  %vm673_vm3 = vcmask (!%p179_p7), 130048   ;;  %vm675_vm4 = vcmask (!%p179_p7), 195584   ;;  %vm701_vm5 = vcmask (!%p179_p7), 261120  }
  0x1a   : > { %s904_s28 = smul.u32 (!%p179_p7), 24, %s185_s27  ;;  %853 = vmatprep.subr.bf16.mxu1 (!%p179_p7), %v979_v3  ;;  %855 = vmatprep.mubr.msk.bf16.mxu1 (!%p179_p7), %vm980_vm0, %v979_v3  ;;  %s983_s5 = smov (!%p179_p7), 104  }
  0x1b   : > { %s984_s10 = smov (!%p179_p7), 8   ;;  %s985_s11 = smov (!%p179_p7), 16  }
  0x1c   : > { %s1050_s29 = scalar_lea.vmem (!%p179_p7), [#allocation2], %s904_s28  ;;  %s986_s12 = smov (!%p179_p7), 24  }
  0x1d   : > { %v212_v4 = vld [vmem:[%s1050_s29] sm:$0xff] (!%p179_p7)  ;;  %v812_v5 = vld [vmem:[%s1050_s29 + $0x8] sm:$0xff] (!%p179_p7)  ;;  %v813_v20 = vld [vmem:[%s1050_s29 + $0x10] sm:$0xff] (!%p179_p7)  ;;  %p207_p8 = scmp.lt.s32.totalorder (!%p179_p7), %s805_s15, 1 }
  0x1e   : > { %v219_v6 = vpack.c.bf16 (!%p179_p7), %v212_v4, %v212_v4  ;;  %v215_v8 = vmul.f32 (!%p179_p7), 0.35355338, %v812_v5  ;;  %v1067_v21 = vpack.c.bf16 (!%p179_p7), %v813_v20, %v813_v20 }
  0x20   : > { %v226_v7 = vsel %vm221_vm1, %v219_v6, 0  ;;  %v218_v9 = vpack.c.bf16 %v215_v8, %v215_v8  ;;  %331 = vrot.lane.b32.xlu1 %v219_v6, %s981_s30  ;;  %v285_v22 = vsel %vm283_vm2, %v1067_v21, 0  ;;  %s1154_s15 = smov (!%p207_p8, %s805_s15), 1 }
  0x21   : > { %848 = vmatpush3.bf16.xpose.msra.mxu0 %v226_v7  ;;  %854 = vmatpush3.bf16.msra.mxu1 %v285_v22  ;;  %s811_s17 = sshll.u32 %s1154_s15, 3 }
  0x22   : > { %865 = vmatprep.subr.bf16.mxu0 %v979_v3  ;;  %859 = vmatprep.subr.bf16.mxu1 %v979_v3  ;;  %s210_s23 = scalar_lea.vmem %s1149_s3, %s811_s17 }
  0x24   : > { %328 = vrot.lane.b32.xlu1 %v218_v9, %s981_s30 }
  0x28   : > { %850 = vmatmul.mubr.msk.bf16.vlgmr.msra.gmra.mrb[0].mxu0 %vm221_vm1, %v218_v9  ;;  %440 = vrot.lane.b32.xlu1 %v218_v9, %s982_s4 }
  0x29   : > { %867 = vmatprep.mubr.msk.bf16.mxu0 %vm980_vm0, %v979_v3 }
  0x2c   : > { %552 = vrot.lane.b32.xlu1 %v219_v6, %s983_s5 }
  0x30   : > { %550 = vrot.lane.b32.xlu1 %v218_v9, %s983_s5 }
  0x92   : > { %v332_v25 = vpop.permute.xlu1 %331 }
  0x93   : > { %v337_v27 = vsel %vm221_vm1, %v332_v25, 0  ;;  %v937_v25 = vld [vmem:[%s1147_s1] sm:$0xff]  }
  0x96   : > { %v329_v29 = vpop.permute.xlu1 %328 }
  0x9a   : > { %v441_v31 = vpop.permute.xlu1 %440 }
  0x9e   : > { %v553_v33 = vpop.permute.xlu1 %552 }
  0x9f   : > { %v558_v34 = vsel %vm221_vm1, %v553_v33, 0 }
  0xa2   : > { %v551_v35 = vpop.permute.xlu1 %550 }
  0xfb   : > { %v262_v10 = vpop.f32.mrb[0].mxu0 }
  0xfc   : > { %v851_v11 = vpop.f32.mrb[1].mxu0  ;;  %v268_v12 = vsel %vm221_vm1, %v262_v10, -inf }
  0xfd   : > { %269 = vmax.xlane.f32.xlu0 %v268_v12  ;;  %v265_v13 = vpop.f32.mrb[2].mxu0 }
  0xfe   : > { %v852_v14 = vpop.f32.mrb[3].mxu0 }
 0x18a   : > { %v270_v15 = vpop.xlane.xlu0 %269 }
 0x18b   : > { %v271_v16 = vsub.f32 %v262_v10, %v270_v15 }
 0x18d   : > { %v272_v17 = vmul.f32 1.442695, %v271_v16 }
 0x18f   : > { %939 = vpow2.f32 %v272_v17 }
 0x199   : > { %v940_v18 = vpop.eup %939 }
 0x19a   : > { %v274_v19 = vsel %vm221_vm1, %v940_v18, 0.0 }
 0x19b   : > { %275 = vadd.xlane.f32.xlu0 %v274_v19 }
 0x1b1   : > { %442 = vrot.lane.b32.xlu0 %v219_v6, %s982_s4 }
 0x228   : > { %v276_v23 = vpop.xlane.xlu0 %275 }
 0x229   : > { %941 = vrcp.f32 %v276_v23 }
 0x22c   : > { %v443_v30 = vpop.permute.xlu0 %442 }
 0x22d   : > { %v448_v32 = vsel %vm221_vm1, %v443_v30, 0 }
 0x233   : > { %v942_v24 = vpop.eup %941 }
 0x234   : > { %v278_v26 = vmul.f32 %v942_v24, %v940_v18 }
 0x236   : > { %v279_v28 = vpack.c.bf16 %v278_v26, %v278_v26  ;;  %v938_v26 = vld [vmem:[%s1147_s1 + $0x8] sm:$0xff]  }
 0x238   : > { %856 = vmatmul.mubr.msk.bf16.vlgmr.msra.gmra.mrb[0].mxu1 %vm221_vm1, %v279_v28 }
 0x239   : > { %860 = vmatpush3.bf16.xpose.msra.mxu1 %v337_v27  ;;  %861 = vmatprep.mubr.msk.bf16.mxu1 %vm980_vm0, %v979_v3 }
 0x23a   : > { %871 = vmatprep.subr.bf16.mxu1 %v979_v3 }
 0x240   : > { %862 = vmatmul.mubr.msk.bf16.vlgmr.msra.gmra.mrb[4].mxu1 %vm221_vm1, %v329_v29 }
 0x241   : > { %872 = vmatpush3.bf16.xpose.msra.mxu1 %v448_v32  ;;  %873 = vmatprep.mubr.msk.bf16.mxu1 %vm980_vm0, %v979_v3 }
 0x242   : > { %883 = vmatprep.subr.bf16.mxu1 %v979_v3 }
 0x248   : > { %874 = vmatmul.mubr.msk.bf16.vlgmr.msra.gmra.mrb[8].mxu1 %vm221_vm1, %v441_v31 }
 0x249   : > { %884 = vmatpush3.bf16.xpose.msra.mxu1 %v558_v34  ;;  %885 = vmatprep.mubr.msk.bf16.mxu1 %vm980_vm0, %v979_v3 }
 0x24a   : > { %895 = vmatprep.subr.bf16.mxu1 %v979_v3 }
 0x250   : > { %886 = vmatmul.mubr.msk.bf16.vlgmr.msra.gmra.mrb[12].mxu1 %vm221_vm1, %v551_v35 }
 0x251   : > { %899 = vmatprep.mubr.msk.bf16.mxu1 %vm980_vm0, %v979_v3  ;;  %896 = vmatpush3.bf16.msra.mxu1 %v937_v25 }
 0x252   : > { %897 = vmatprep.subr.bf16.mxu1 %v979_v3 }
 0x255   : > { %898 = vmatpush3.bf16.msra.mxu1 %v938_v26 }
 0x30b   : > { %v1091_v36 = vpop.f32.mrb[0].mxu1 }
 0x30c   : > { %v857_v37 = vpop.f32.mrb[1].mxu1 }
 0x30d   : > { %v324_v38 = vpop.f32.mrb[2].mxu1 }
 0x30e   : > { %v858_v39 = vpop.f32.mrb[3].mxu1 }
 0x313   : > { %v373_v40 = vpop.f32.mrb[4].mxu1 }
 0x314   : > { %v863_v41 = vpop.f32.mrb[5].mxu1  ;;  %v379_v42 = vsel %vm221_vm1, %v373_v40, -inf }
 0x315   : > { %380 = vmax.xlane.f32.xlu1 %v379_v42  ;;  %v376_v43 = vpop.f32.mrb[6].mxu1 }
 0x316   : > { %v864_v44 = vpop.f32.mrb[7].mxu1 }
 0x31b   : > { %v484_v45 = vpop.f32.mrb[8].mxu1 }
 0x31c   : > { %v490_v46 = vsel %vm221_vm1, %v484_v45, -inf  ;;  %v875_v47 = vpop.f32.mrb[9].mxu1 }
 0x31d   : > { %491 = vmax.xlane.f32.xlu0 %v490_v46  ;;  %v487_v48 = vpop.f32.mrb[10].mxu1  ;;  %v822_v46 = vld [vmem:[%s1148_s2] ss:$0 sm:$0xff] }
 0x31e   : > { %v876_v49 = vpop.f32.mrb[11].mxu1 }
 0x323   : > { %v594_v50 = vpop.f32.mrb[12].mxu1 }
 0x324   : > { %v600_v51 = vsel %vm221_vm1, %v594_v50, -inf  ;;  %v887_v52 = vpop.f32.mrb[13].mxu1 }
 0x325   : > { %601 = vmax.xlane.f32.xlu1 %v600_v51  ;;  %v597_v53 = vpop.f32.mrb[14].mxu1 }
 0x326   : > { %v888_v54 = vpop.f32.mrb[15].mxu1 }
 0x3a2   : > { %v381_v55 = vpop.xlane.xlu1 %380 }
 0x3a3   : > { %v382_v56 = vsub.f32 %v373_v40, %v381_v55 }
 0x3a5   : > { %v383_v57 = vmul.f32 1.442695, %v382_v56 }
 0x3a7   : > { %943 = vpow2.f32 %v383_v57 }
 0x3aa   : > { %v492_v58 = vpop.xlane.xlu0 %491 }
 0x3ab   : > { %v493_v59 = vsub.f32 %v484_v45, %v492_v58 }
 0x3ad   : > { %v494_v60 = vmul.f32 1.442695, %v493_v59 }
 0x3af   : > { %945 = vpow2.f32 %v494_v60 }
 0x3b1   : > { %v944_v61 = vpop.eup %943 }
 0x3b2   : > { %v385_v62 = vsel %vm221_vm1, %v944_v61, 0.0  ;;  %v602_v1 = vpop.xlane.xlu1 %601 }
 0x3b3   : > { %386 = vadd.xlane.f32.xlu1 %v385_v62  ;;  %v603_v2 = vsub.f32 %v594_v50, %v602_v1 }
 0x3b5   : > { %v604_v4 = vmul.f32 1.442695, %v603_v2 }
 0x3b7   : > { %947 = vpow2.f32 %v604_v4 }
 0x3b9   : > { %v946_v63 = vpop.eup %945 }
 0x3ba   : > { %v496_v0 = vsel %vm221_vm1, %v946_v63, 0.0 }
 0x3bb   : > { %497 = vadd.xlane.f32.xlu0 %v496_v0 }
 0x3c1   : > { %v948_v5 = vpop.eup %947 }
 0x3c2   : > { %v606_v6 = vsel %vm221_vm1, %v948_v5, 0.0 }
 0x3c4   : > { %502 = vrot.lane.b32.xlu1 %v1067_v21, %s982_s4 }
 0x3d1   : > { %392 = vrot.lane.b32.xlu0 %v1067_v21, %s981_s30 }
 0x3e8   : > { %607 = vadd.xlane.f32.xlu1 %v606_v6 }
 0x3f9   : > { %612 = vrot.lane.b32.xlu1 %v1067_v21, %s983_s5 }
 0x440   : > { %v387_v7 = vpop.xlane.xlu1 %386 }
 0x441   : > { %949 = vrcp.f32 %v387_v7 }
 0x444   : > { %v503_v13 = vpop.permute.xlu1 %502 }
 0x445   : > { %v508_v15 = vsel %vm283_vm2, %v503_v13, 0 }
 0x448   : > { %v498_v8 = vpop.xlane.xlu0 %497 }
 0x449   : > { %951 = vrcp.f32 %v498_v8 }
 0x44b   : > { %v950_v9 = vpop.eup %949 }
 0x44c   : > { %v389_v10 = vmul.f32 %v950_v9, %v944_v61  ;;  %v393_v11 = vpop.permute.xlu0 %392 }
 0x44d   : > { %v398_v12 = vsel %vm283_vm2, %v393_v11, 0 }
 0x44e   : > { %866 = vmatpush3.bf16.msra.mxu0 %v398_v12  ;;  %v390_v14 = vpack.c.bf16 %v389_v10, %v389_v10 }
 0x44f   : > { %877 = vmatprep.subr.bf16.mxu0 %v979_v3 }
 0x451   : > { %868 = vmatmul.mubr.msk.bf16.vlgmr.msra.gmra.mrb[4].mxu0 %vm221_vm1, %v390_v14 }
 0x452   : > { %878 = vmatpush3.bf16.msra.mxu0 %v508_v15  ;;  %879 = vmatprep.mubr.msk.bf16.mxu0 %vm980_vm0, %v979_v3 }
 0x453   : > { %v952_v16 = vpop.eup %951  ;;  %889 = vmatprep.subr.bf16.mxu0 %v979_v3 }
 0x454   : > { %v500_v17 = vmul.f32 %v952_v16, %v946_v63 }
 0x456   : > { %v501_v18 = vpack.c.bf16 %v500_v17, %v500_v17 }
 0x459   : > { %880 = vmatmul.mubr.msk.bf16.vlgmr.msra.gmra.mrb[8].mxu0 %vm221_vm1, %v501_v18 }
 0x45a   : > { %891 = vmatprep.mubr.msk.bf16.mxu0 %vm980_vm0, %v979_v3 }
 0x475   : > { %v608_v19 = vpop.xlane.xlu1 %607 }
 0x476   : > { %953 = vrcp.f32 %v608_v19 }
 0x479   : > { %v613_v20 = vpop.permute.xlu1 %612 }
 0x47a   : > { %v618_v21 = vsel %vm283_vm2, %v613_v20, 0 }
 0x47b   : > { %890 = vmatpush3.bf16.msra.mxu0 %v618_v21 }
 0x480   : > { %v954_v22 = vpop.eup %953 }
 0x481   : > { %v610_v23 = vmul.f32 %v954_v22, %v948_v5 }
 0x483   : > { %v611_v24 = vpack.c.bf16 %v610_v23, %v610_v23 }
 0x485   : > { %892 = vmatmul.mubr.msk.bf16.vlgmr.msra.gmra.mrb[12].mxu0 %vm221_vm1, %v611_v24 }
 0x524   : > { %v434_v27 = vpop.f32.mrb[4].mxu0 }
 0x525   : > { %661 = vrot.lane.b32.xlu0 %v434_v27, %s984_s10  ;;  %v869_v28 = vpop.f32.mrb[5].mxu0 }
 0x526   : > { %v437_v29 = vpop.f32.mrb[6].mxu0 }
 0x527   : > { %v870_v30 = vpop.f32.mrb[7].mxu0 }
 0x52c   : > { %v544_v31 = vpop.f32.mrb[8].mxu0 }
 0x52d   : > { %665 = vrot.lane.b32.xlu1 %v544_v31, %s985_s11  ;;  %v881_v32 = vpop.f32.mrb[9].mxu0 }
 0x52e   : > { %v547_v33 = vpop.f32.mrb[10].mxu0 }
 0x52f   : > { %v882_v34 = vpop.f32.mrb[11].mxu0 }
 0x558   : > { %v654_v35 = vpop.f32.mrb[12].mxu0 }
 0x559   : > { %669 = vrot.lane.b32.xlu0 %v654_v35, %s986_s12  ;;  %v893_v37 = vpop.f32.mrb[13].mxu0 }
 0x55a   : > { %v657_v3 = vpop.f32.mrb[14].mxu0 }
 0x55b   : > { %v894_v38 = vpop.f32.mrb[15].mxu0 }
 0x597   : > { %v662_v39 = vpop.permute.xlu0 %661 }
 0x598   : > { %v672_v41 = vsel %vm221_vm1, %v1091_v36, %v662_v39 }
 0x59f   : > { %v666_v40 = vpop.permute.xlu1 %665 }
 0x5a0   : > { %v674_v42 = vsel %vm673_vm3, %v672_v41, %v666_v40 }
 0x5cb   : > { %v670_v43 = vpop.permute.xlu0 %669 }
 0x5cc   : > { %v676_v44 = vsel %vm675_vm4, %v674_v42, %v670_v43 }
 0x5cd   : > { %v677_v45 = vpack.c.bf16 %v676_v44, %v676_v44 }
 0x5cf   : > { %900 = vmatmul.mubr.msk.bf16.vlgmr.msra.gmra.mrb[16].mxu1 %vm701_vm5, %v677_v45 }
 0x6a2   : > { %v739_v36 = vpop.f32.mrb[16].mxu1 }
 0x6a3   : > { %v740_v47 = vadd.f32 %v822_v46, %v739_v36  ;;  %v901_v48 = vpop.f32.mrb[17].mxu1 }
 0x6a4   : > { %v742_v49 = vpop.f32.mrb[18].mxu1 }
 0x6a5   : > { %745 = vst.msk [vmem:[%s210_s23] sm:$0xff] %vm701_vm5, %v740_v47  ;;  %v902_v50 = vpop.f32.mrb[19].mxu1 }
 0x6a6 PF: > { %p10_p9 = scmp.ge.s32.totalorder %s1024_s16, 4   ;;  %s1150_s12 = smov %s973_s13 }
 0x6a7   : > { %s1151_s13 = smov %s1033_s19  ;;  %s1152_s14 = smov %s1024_s16 }
 0x6a8   :  { %12 = sbr.rel (!%p10_p9) target bundleno = 2 (0x2), region = 107 }

// kernel: vit_layer_forward.5
= control target key start
LH: loop header
LB: loop body
LE: loop exit
PB: predicated region body
PF: predicated region fallthrough
CT: control target
= control target key end

     0   :  { %s1022_s27 = smov 0   ;;  %s1024_s28 = smov 0   ;;  %s1099_s0 = inlined_call_operand.vmem [shape: f32[16,32], index: 0, kind: input, shape index: {}]   ;;  %s1100_s1 = inlined_call_operand.vmem [shape: f32[3,16,32], index: 1, kind: input, shape index: {}]   ;;  %s1101_s2 = inlined_call_operand.vmem [shape: f32[3,1,32], index: 2, kind: input, shape index: {}]   ;;  %s1102_s3 = inlined_call_operand.vmem [shape: f32[3,1,32], index: 3, kind: input, shape index: {}]   ;;  %s1103_s4 = inlined_call_operand.vmem [shape: bf16[3,32,64], index: 4, kind: input, shape index: {}]   ;;  %s1104_s5 = inlined_call_operand.vmem [shape: f32[3,1,64], index: 5, kind: input, shape index: {}]   ;;  %s1105_s6 = inlined_call_operand.vmem [shape: bf16[3,64,32], index: 6, kind: input, shape index: {}]   ;;  %s1106_s7 = inlined_call_operand.vmem [shape: f32[3,1,32], index: 7, kind: input, shape index: {}]   ;;  %s1107_s8 = inlined_call_operand.vmem [shape: f32[3,16,32], index: 8, kind: output, shape index: {}]  }
   0x1   :  { %s1026_s29 = smov 0  }
   0x2 LB: > { %s30_s30 = sadd.s32 1, %s969_s28  ;;  %p856_p0 = scmp.ge.s32.totalorder %s973_s29, 1  ;;  %s973_s29 = sphi %s1026_s29, %s18_s29   ;;  %s969_s28 = sphi %s1024_s28, %s1109_s28   ;;  %s965_s27 = sphi %s1022_s27, %s1108_s27  }
   0x3   : > { %p32_p1 = scmp.ge.s32.totalorder %s30_s30, 3  ;;  %p346_p2 = scmp.lt.s32.totalorder %s973_s29, 4 }
   0x5   : > { %s1111_s30 = smov (%p32_p1, %s30_s30), 0  ;;  %p347_p3 = pnand %p856_p0, %p346_p2 }
   0x6   : > { %p422_p4 = scmp.lt.s32.totalorder (!%p347_p3), %s965_s27, 2  ;;  %v464_v0 = vld [vmem:[%s1099_s0] sm:$0xff] (!%p347_p3)  ;;  %v465_v1 = vld [vmem:[%s1099_s0 + $0x8] sm:$0xff] (!%p347_p3)  ;;  %vm470_vm0 = vcmask (!%p347_p3), 261120   ;;  %v975_v19 = vmov (!%p347_p3), 0.0   ;;  %vm976_vm1 = vmmov (!%p347_p3), 0  }
   0x7   : > { %350 = sbr.rel (%p347_p3) target bundleno = 801 (0x321), region = 52  ;;  %891 = vmatprep.subr.bf16.mxu0 (!%p347_p3), %v975_v19  ;;  %899 = vmatprep.subr.bf16.mxu1 (!%p347_p3), %v975_v19  ;;  %vm642_vm2 = vcmask (!%p347_p3), 523264  }
   0x8   : > { %895 = vmatprep.mubr.msk.bf16.mxu0 (!%p347_p3), %vm976_vm1, %v975_v19  ;;  %907 = vmatprep.mubr.msk.bf16.mxu1 (!%p347_p3), %vm976_vm1, %v975_v19 }
   0xe   : > { %s1113_s27 = smov (!%p422_p4, %s965_s27), 2 }
   0xf   : > { %s1043_s9 = sshll.u32 %s1113_s27, 4  ;;  %s433_s22 = scalar_lea.vmem %s1101_s2, %s1113_s27 }
  0x10   : > { %s429_s16 = scalar_lea.vmem %s1100_s1, %s1043_s9  ;;  %s441_s19 = scalar_lea.vmem %s1103_s4, %s1043_s9  ;;  %v865_v29 = vld [vmem:[%s433_s22] ss:$0 sm:$0xff] }
  0x11   : > { %v466_v2 = vld [vmem:[%s429_s16] sm:$0xff]  ;;  %v467_v3 = vld [vmem:[%s429_s16 + $0x8] sm:$0xff]  ;;  %s436_s25 = scalar_lea.vmem %s1102_s3, %s1113_s27  ;;  %s881_s26 = sshll.u32 %s1113_s27, 5 }
  0x12   : > { %v468_v4 = vadd.f32 %v466_v2, %v464_v0  ;;  %v469_v5 = vadd.f32 %v467_v3, %v465_v1  ;;  %v937_v18 = vld [vmem:[%s441_s19] sm:$0xff]   ;;  %v938_v20 = vld [vmem:[%s441_s19 + $0x8] sm:$0xff]   ;;  %s449_s12 = scalar_lea.vmem %s1105_s6, %s881_s26  ;;  %s444_s15 = scalar_lea.vmem %s1104_s5, %s1113_s27 }
  0x13   : > { %892 = vmatpush3.bf16.msra.mxu0 %v937_v18  ;;  %v866_v33 = vld [vmem:[%s436_s25] ss:$0 sm:$0xff]  ;;  %v940_v39 = vld [vmem:[%s449_s12 + $0x8] sm:$0xff]   ;;  %v941_v40 = vld [vmem:[%s449_s12 + $0x10] sm:$0xff]   ;;  %s452_s18 = scalar_lea.vmem %s1106_s7, %s1113_s27  ;;  %s461_s21 = scalar_lea.vmem %s1107_s8, %s1043_s9 }
  0x14   : > { %v471_v6 = vsel %vm470_vm0, %v468_v4, 0.0  ;;  %v474_v7 = vsel %vm470_vm0, %v469_v5, 0.0  ;;  %893 = vmatprep.subr.bf16.mxu0 %v975_v19  ;;  %v939_v38 = vld [vmem:[%s449_s12] sm:$0xff]   ;;  %v942_v41 = vld [vmem:[%s449_s12 + $0x18] sm:$0xff]  }
  0x15   : > { %472 = vadd.xlane.f32.xlu0 %v471_v6  ;;  %900 = vmatpush3.bf16.msra.mxu1 %v939_v38  ;;  %v867_v42 = vld [vmem:[%s444_s15] ss:$0 sm:$0xff] }
  0x16   : > { %901 = vmatprep.subr.bf16.mxu1 %v975_v19 }
  0x17   : > { %894 = vmatpush3.bf16.msra.mxu0 %v938_v20 }
  0x19   : > { %475 = vadd.xlane.f32.xlu0 %v474_v7  ;;  %902 = vmatpush3.bf16.msra.mxu1 %v940_v39 }
  0x1a   : > { %903 = vmatprep.subr.bf16.mxu1 %v975_v19 }
  0x1d   : > { %904 = vmatpush3.bf16.msra.mxu1 %v941_v40 }
  0x1e   : > { %905 = vmatprep.subr.bf16.mxu1 %v975_v19 }
  0x21   : > { %906 = vmatpush3.bf16.msra.mxu1 %v942_v41 }
  0xa2   : > { %v473_v8 = vpop.xlane.xlu0 %472 }
  0xa3   : > { %v478_v9 = vmul.f32 0.03125, %v473_v8 }
  0xa5   : > { %v480_v10 = vsub.f32 %v468_v4, %v478_v9  ;;  %v871_v4 = vld [vmem:[%s452_s18] ss:$0 sm:$0xff] }
  0xa6   : > { %v476_v11 = vpop.xlane.xlu0 %475 }
  0xa7   : > { %v479_v12 = vmul.f32 0.03125, %v476_v11  ;;  %v482_v13 = vmul.f32 %v480_v10, %v480_v10 }
  0xa9   : > { %v481_v14 = vsub.f32 %v469_v5, %v479_v12  ;;  %v484_v15 = vsel %vm470_vm0, %v482_v13, 0.0 }
  0xaa   : > { %485 = vadd.xlane.f32.xlu1 %v484_v15 }
  0xab   : > { %v483_v16 = vmul.f32 %v481_v14, %v481_v14 }
  0xad   : > { %v487_v17 = vsel %vm470_vm0, %v483_v16, 0.0 }
  0xae   : > { %488 = vadd.xlane.f32.xlu1 %v487_v17 }
 0x137   : > { %v486_v21 = vpop.xlane.xlu1 %485 }
 0x138   : > { %v490_v22 = vmul.f32 0.03125, %v486_v21 }
 0x13a   : > { %v492_v23 = vadd.f32 1e-12, %v490_v22 }
 0x13b   : > { %v489_v24 = vpop.xlane.xlu1 %488 }
 0x13c   : > { %943 = vrsqrt.f32 %v492_v23  ;;  %v491_v25 = vmul.f32 0.03125, %v489_v24 }
 0x13e   : > { %v493_v26 = vadd.f32 1e-12, %v491_v25 }
 0x140   : > { %945 = vrsqrt.f32 %v493_v26 }
 0x146   : > { %v944_v27 = vpop.eup %943 }
 0x147   : > { %v496_v28 = vmul.f32 %v944_v27, %v480_v10 }
 0x149   : > { %v505_v32 = vmul.f32 %v865_v29, %v496_v28 }
 0x14a   : > { %v946_v30 = vpop.eup %945 }
 0x14b   : > { %v497_v31 = vmul.f32 %v946_v30, %v481_v14  ;;  %v514_v35 = vadd.f32 %v866_v33, %v505_v32 }
 0x14d   : > { %v506_v34 = vmul.f32 %v865_v29, %v497_v31 }
 0x14f   : > { %v515_v36 = vadd.f32 %v866_v33, %v506_v34 }
 0x151   : > { %v516_v37 = vpack.c.bf16 %v515_v36, %v514_v35 }
 0x153   : > { %896 = vmatmul.mubr.msk.bf16.vlgmr.msra.gmra.mrb[0].mxu0 %vm470_vm0, %v516_v37 }
 0x226   : > { %v577_v43 = vpop.f32.mrb[0].mxu0 }
 0x227   : > { %v578_v44 = vadd.f32 %v867_v42, %v577_v43  ;;  %v897_v45 = vpop.f32.mrb[1].mxu0 }
 0x228   : > { %v580_v46 = vpop.f32.mrb[2].mxu0 }
 0x229   : > { %v584_v47 = vmul.f32 %v578_v44, %v578_v44  ;;  %v581_v48 = vadd.f32 %v867_v42, %v580_v46  ;;  %v898_v49 = vpop.f32.mrb[3].mxu0 }
 0x22b   : > { %v586_v50 = vmul.f32 %v584_v47, %v578_v44  ;;  %v585_v51 = vmul.f32 %v581_v48, %v581_v48 }
 0x22d   : > { %v588_v52 = vmul.f32 0.044715, %v586_v50  ;;  %v587_v53 = vmul.f32 %v585_v51, %v581_v48 }
 0x22f   : > { %v590_v54 = vadd.f32 %v588_v52, %v578_v44  ;;  %v589_v55 = vmul.f32 0.044715, %v587_v53 }
 0x231   : > { %v592_v56 = vmul.f32 0.7978846, %v590_v54  ;;  %v591_v57 = vadd.f32 %v589_v55, %v581_v48 }
 0x233   : > { %947 = vtanh.f32 %v592_v56  ;;  %v593_v58 = vmul.f32 0.7978846, %v591_v57 }
 0x235   : > { %949 = vtanh.f32 %v593_v58 }
 0x23d   : > { %v948_v59 = vpop.eup %947 }
 0x23e   : > { %v596_v60 = vadd.f32 1.0, %v948_v59 }
 0x23f   : > { %v950_v61 = vpop.eup %949 }
 0x240   : > { %v598_v62 = vmul.f32 0.5, %v596_v60  ;;  %v597_v63 = vadd.f32 1.0, %v950_v61 }
 0x242   : > { %v599_v0 = vmul.f32 0.5, %v597_v63  ;;  %v600_v1 = vmul.f32 %v598_v62, %v578_v44 }
 0x244   : > { %v601_v2 = vmul.f32 %v599_v0, %v581_v48 }
 0x246   : > { %v602_v3 = vpack.c.bf16 %v601_v2, %v600_v1 }
 0x248   : > { %908 = vmatmul.mubr.msk.bf16.vlgmr.msra.gmra.mrb[0].mxu1 %vm642_vm2, %v602_v3 }
 0x31b   : > { %v680_v5 = vpop.f32.mrb[0].mxu1 }
 0x31c   : > { %v681_v6 = vadd.f32 %v871_v4, %v680_v5  ;;  %v909_v7 = vpop.f32.mrb[1].mxu1 }
 0x31d   : > { %v683_v8 = vpop.f32.mrb[2].mxu1 }
 0x31e   : > { %687 = vst.msk [vmem:[%s461_s21] sm:$0xff] %vm470_vm0, %v681_v6  ;;  %v684_v9 = vadd.f32 %v871_v4, %v683_v8  ;;  %v910_v10 = vpop.f32.mrb[3].mxu1 }
 0x320   : > { %688 = vst.msk [vmem:[%s461_s21 + $0x8] sm:$0xff] %vm470_vm0, %v684_v9 }
 0x321 PF: > { %s18_s29 = sadd.s32 1, %s973_s29   ;;  %s1108_s27 = smov %s969_s28 }
 0x322   : > { %p15_p5 = scmp.ge.s32.totalorder %s18_s29, 5   ;;  %s1109_s28 = smov %s1111_s30 }
 0x324   :  { %17 = sbr.rel (!%p15_p5) target bundleno = 2 (0x2), region = 103 }

</bundles_post_ra>
